<compile_context>
chip_gen: v7x
topology: tpu7x:2x2x1
jax: 0.10.0
libtpu: 0.0.40
codegen_flags: <defaults>
</compile_context>

<pallas_src>
import jax
import jax.numpy as jnp
from jax.experimental import pallas as pl
from jax.experimental.pallas import tpu as pltpu

_MAX_TM = 32768   # lane-tile cap (multiple of 128)
_MAX_NB = 16      # batch-fold cap (bounds kernel-body unroll)


def _make_kernel(has_bias):
    if has_bias:
        def kernel(w_ref, x_ref, b_ref, o_ref):
            w = w_ref[...]                       # (C_out, C_in)
            b = b_ref[...]                       # (C_out, 1), f32, lane-broadcast
            for i in range(x_ref.shape[0]):      # nb is small & static -> unrolled
                acc = jnp.dot(w, x_ref[i], preferred_element_type=jnp.float32)
                o_ref[i] = (acc + b).astype(o_ref.dtype)
    else:
        def kernel(w_ref, x_ref, o_ref):
            w = w_ref[...]
            for i in range(x_ref.shape[0]):
                acc = jnp.dot(w, x_ref[i], preferred_element_type=jnp.float32)
                o_ref[i] = acc.astype(o_ref.dtype)
    return kernel


def _vmem_limit_bytes():
    """Generation-aware scoped-VMEM limit (v7x: 64 MiB/TC, v5e/v6e: 128 MiB)."""
    try:
        cap = int(pltpu.get_tpu_info().vmem_capacity_bytes)
    except Exception:
        cap = 64 * 1024 * 1024                   # conservative: v7x per-TC size
    return min(cap // 2, 64 * 1024 * 1024)


def _round_down_128(v):
    return max(128, (v // 128) * 128)


def _choose_tiles(N, HW, C_in, C_out, dtype_bytes, target_bytes):
    """Pick (nb, tm): batch rows folded per block, and lane tile size."""
    per_col = (C_in + C_out) * dtype_bytes       # x + out bytes per lane column
    tm = min(_MAX_TM, _round_down_128(target_bytes // max(per_col, 1)))
    if tm >= HW:
        tm = HW                                  # full extent is always legal
    nb = 1
    block_bytes = per_col * tm
    if block_bytes < target_bytes:               # HW too small: fold batch rows
        nb = int(min(N, _MAX_NB, max(1, target_bytes // max(block_bytes, 1))))
    # Keep >= 2 grid steps so both v7x TensorCores get work.
    if pl.cdiv(N, nb) * pl.cdiv(HW, tm) < 2:
        if HW >= 256:
            tm = ((HW + 1) // 2 + 127) // 128 * 128
        elif N >= 2:
            nb = (N + 1) // 2
    return nb, tm


def linear_1x1(x_nchw, weight, bias=None, *, tm=None, nb=None, matmul_dtype=None):
    """1x1 Conv2d forward (per-pixel linear over channels).

    x_nchw: (N, C_in, H, W); weight: (C_out, C_in, 1, 1); bias: (C_out,) or None.
    Returns (N, C_out, H, W) in x's dtype.
    """
    N, C_in, H, W = x_nchw.shape
    C_out = weight.shape[0]
    HW = H * W
    out_dtype = x_nchw.dtype

    w2d = weight.reshape(C_out, C_in)
    x3d = x_nchw.reshape(N, C_in, HW)            # free reshape, no transpose
    if matmul_dtype is not None:                 # bf16 fast path: halve HBM reads
        w2d = w2d.astype(matmul_dtype)
        x3d = x3d.astype(matmul_dtype)
    dtype_bytes = jnp.dtype(x3d.dtype).itemsize

    vmem_limit = _vmem_limit_bytes()
    target_bytes = min(2 * 1024 * 1024, vmem_limit // 8)

    auto_nb, auto_tm = _choose_tiles(N, HW, C_in, C_out, dtype_bytes, target_bytes)
    if tm is None:
        tm = auto_tm
    elif tm >= HW:
        tm = HW
    else:
        tm = _round_down_128(min(tm, HW))        # keep (8,128)-legal lane tiles
        if tm >= HW:
            tm = HW
    nb = auto_nb if nb is None else int(max(1, min(nb, N)))

    grid = (pl.cdiv(N, nb), pl.cdiv(HW, tm))
    has_bias = bias is not None
    if has_bias:
        b2d = bias.reshape(C_out, 1).astype(jnp.float32)   # bias add stays f32

    def run(single_buffer_consts):
        # Grid-invariant operands: a single resident buffer (no dead 2nd buffer).
        const_kw = dict(pipeline_mode=pl.Buffered(1)) if single_buffer_consts else {}
        in_specs = [
            pl.BlockSpec((C_out, C_in), lambda n, j: (0, 0), **const_kw),
            pl.BlockSpec((nb, C_in, tm), lambda n, j: (n, 0, j)),
        ]
        args = [w2d, x3d]
        if has_bias:
            in_specs.append(
                pl.BlockSpec((C_out, 1), lambda n, j: (0, 0), **const_kw))
            args.append(b2d)
        return pl.pallas_call(
            _make_kernel(has_bias),
            out_shape=jax.ShapeDtypeStruct((N, C_out, HW), out_dtype),
            grid_spec=pltpu.PrefetchScalarGridSpec(
                num_scalar_prefetch=0,
                grid=grid,
                in_specs=in_specs,
                out_specs=pl.BlockSpec((nb, C_out, tm), lambda n, j: (n, 0, j)),
            ),
            compiler_params=pltpu.CompilerParams(
                dimension_semantics=("parallel", "parallel"),
                vmem_limit_bytes=vmem_limit,
            ),
        )(*args)

    try:
        out = run(True)
    except Exception:
        # pipeline_mode=pl.Buffered(1) unsupported on this jax/libtpu: fall back
        # to default double-buffering for the (small) weight/bias blocks.
        out = run(False)

    return out.reshape(N, C_out, H, W)           # free reshape back to NCHW


if __name__ == "__main__":
    key = jax.random.PRNGKey(0)
    k_x, k_w, k_b = jax.random.split(key, 3)

    # Small shapes consistent with the module: batch=2, c_in=4, c_out=8, 16x16.
    N, C_in, C_out, H, W = 2, 4, 8, 16, 16
    x = jax.random.normal(k_x, (N, C_in, H, W), dtype=jnp.float32)
    weight = jax.random.normal(k_w, (C_out, C_in, 1, 1), dtype=jnp.float32) * 0.1
    bias = jax.random.normal(k_b, (C_out,), dtype=jnp.float32) * 0.1

    ref = jnp.einsum("nchw,oc->nohw", x, weight.reshape(C_out, C_in)) \
        + bias.reshape(1, C_out, 1, 1)
    ref_nobias = jnp.einsum("nchw,oc->nohw", x, weight.reshape(C_out, C_in))

    # Default f32 path, with bias.
    y = jax.block_until_ready(linear_1x1(x, weight, bias))
    assert y.shape == (N, C_out, H, W)
    assert jnp.allclose(y, ref, atol=1e-5, rtol=1e-5)

    # bias=None path (kernel variant without the bias operand / DMA).
    y0 = jax.block_until_ready(linear_1x1(x, weight, None))
    assert jnp.allclose(y0, ref_nobias, atol=1e-5, rtol=1e-5)

    # Explicit non-128-multiple tm: exercises tile rounding robustness.
    y_tm = jax.block_until_ready(linear_1x1(x, weight, bias, tm=100, nb=1))
    assert jnp.allclose(y_tm, ref, atol=1e-5, rtol=1e-5)

    # bf16 matmul fast path (f32 accumulation, f32 bias/output).
    y_bf16 = jax.block_until_ready(
        linear_1x1(x, weight, bias, matmul_dtype=jnp.bfloat16))
    assert jnp.allclose(y_bf16, ref, atol=2e-2, rtol=2e-2)

    print("KERNEL_OK")
</pallas_src>

<mosaic_0001>
module attributes {stable_mosaic.version = 11 : i64} {
  func.func @kernel(%arg0: i32, %arg1: i32, %arg2: memref<8x4xf32, #tpu.memory_space<vmem>>, %arg3: memref<2x4x128xf32, #tpu.memory_space<vmem>>, %arg4: memref<8x1xf32, #tpu.memory_space<vmem>>, %arg5: memref<2x8x128xf32, #tpu.memory_space<vmem>>) attributes {dimension_semantics = [#tpu.dimension_semantics<parallel>, #tpu.dimension_semantics<parallel>], iteration_bounds = array<i64: 1, 2>, scalar_prefetch = 0 : i64, scratch_operands = 0 : i64, tpu.core_type = #tpu.core_type<tc>, window_params = [{pipeline_mode = #tpu.pipeline_mode<synchronous>, transform_indices = @transform_0, window_bounds = array<i64: 8, 4>}, {transform_indices = @transform_1, window_bounds = array<i64: 2, 4, 128>}, {pipeline_mode = #tpu.pipeline_mode<synchronous>, transform_indices = @transform_2, window_bounds = array<i64: 8, 1>}, {transform_indices = @transform_3, window_bounds = array<i64: 2, 8, 128>}]} {
    %c0 = arith.constant 0 : index
    %c0_0 = arith.constant 0 : index
    %0 = vector.load %arg2[%c0, %c0_0] : memref<8x4xf32, #tpu.memory_space<vmem>>, vector<8x4xf32>
    %c0_1 = arith.constant 0 : index
    %c0_2 = arith.constant 0 : index
    %1 = vector.load %arg4[%c0_1, %c0_2] : memref<8x1xf32, #tpu.memory_space<vmem>>, vector<8x1xf32>
    %c0_3 = arith.constant 0 : index
    %c0_4 = arith.constant 0 : index
    %c0_5 = arith.constant 0 : index
    %2 = vector.load %arg3[%c0_3, %c0_4, %c0_5] : memref<2x4x128xf32, #tpu.memory_space<vmem>>, vector<1x4x128xf32>
    %3 = vector.shape_cast %2 : vector<1x4x128xf32> to vector<4x128xf32>
    %cst = arith.constant dense<0.000000e+00> : vector<8x128xf32>
    %4 = tpu.matmul %0, %3, %cst {dimension_numbers = #tpu.dot_dimension_numbers<[1], [0], [0], [1], [0, 0, 1, 1], [], []>} : vector<8x4xf32>, vector<4x128xf32>, vector<8x128xf32> -> vector<8x128xf32>
    %5 = vector.broadcast %1 : vector<8x1xf32> to vector<8x128xf32>
    %6 = arith.addf %4, %5 : vector<8x128xf32>
    %c0_6 = arith.constant 0 : index
    %c0_7 = arith.constant 0 : index
    %c0_8 = arith.constant 0 : index
    %7 = vector.load %arg5[%c0_6, %c0_7, %c0_8] : memref<2x8x128xf32, #tpu.memory_space<vmem>>, vector<1x8x128xf32>
    %8 = vector.shape_cast %7 : vector<1x8x128xf32> to vector<8x128xf32>
    %9 = vector.shape_cast %6 : vector<8x128xf32> to vector<1x8x128xf32>
    tpu.vector_store %arg5[%c0_6, %c0_7, %c0_8], %9 {strides = array<i32>} : memref<2x8x128xf32, #tpu.memory_space<vmem>>, vector<1x8x128xf32>,
    %c1 = arith.constant 1 : index
    %c0_9 = arith.constant 0 : index
    %c0_10 = arith.constant 0 : index
    %10 = vector.load %arg3[%c1, %c0_9, %c0_10] : memref<2x4x128xf32, #tpu.memory_space<vmem>>, vector<1x4x128xf32>
    %11 = vector.shape_cast %10 : vector<1x4x128xf32> to vector<4x128xf32>
    %cst_11 = arith.constant dense<0.000000e+00> : vector<8x128xf32>
    %12 = tpu.matmul %0, %11, %cst_11 {dimension_numbers = #tpu.dot_dimension_numbers<[1], [0], [0], [1], [0, 0, 1, 1], [], []>} : vector<8x4xf32>, vector<4x128xf32>, vector<8x128xf32> -> vector<8x128xf32>
    %13 = vector.broadcast %1 : vector<8x1xf32> to vector<8x128xf32>
    %14 = arith.addf %12, %13 : vector<8x128xf32>
    %c1_12 = arith.constant 1 : index
    %c0_13 = arith.constant 0 : index
    %c0_14 = arith.constant 0 : index
    %15 = vector.load %arg5[%c1_12, %c0_13, %c0_14] : memref<2x8x128xf32, #tpu.memory_space<vmem>>, vector<1x8x128xf32>
    %16 = vector.shape_cast %15 : vector<1x8x128xf32> to vector<8x128xf32>
    %17 = vector.shape_cast %14 : vector<8x128xf32> to vector<1x8x128xf32>
    tpu.vector_store %arg5[%c1_12, %c0_13, %c0_14], %17 {strides = array<i32>} : memref<2x8x128xf32, #tpu.memory_space<vmem>>, vector<1x8x128xf32>,
    return
  }
  func.func @transform_0(%arg0: i32, %arg1: i32) -> (i32, i32) {
    %c0_i32 = arith.constant 0 : i32
    %c0_i32_0 = arith.constant 0 : i32
    %c0_i32_1 = arith.constant 0 : i32
    return %c0_i32, %c0_i32_0 : i32, i32
  }
  func.func @transform_1(%arg0: i32, %arg1: i32) -> (i32, i32, i32) {
    %c0_i32 = arith.constant 0 : i32
    %c0_i32_0 = arith.constant 0 : i32
    return %arg0, %c0_i32, %arg1 : i32, i32, i32
  }
  func.func @transform_2(%arg0: i32, %arg1: i32) -> (i32, i32) {
    %c0_i32 = arith.constant 0 : i32
    %c0_i32_0 = arith.constant 0 : i32
    %c0_i32_1 = arith.constant 0 : i32
    return %c0_i32, %c0_i32_0 : i32, i32
  }
  func.func @transform_3(%arg0: i32, %arg1: i32) -> (i32, i32, i32) {
    %c0_i32 = arith.constant 0 : i32
    %c0_i32_0 = arith.constant 0 : i32
    return %arg0, %c0_i32, %arg1 : i32, i32, i32
  }
}

module attributes {stable_mosaic.version = 11 : i64} {
  func.func @kernel(%arg0: i32, %arg1: i32, %arg2: memref<8x4xf32, #tpu.memory_space<vmem>>, %arg3: memref<2x4x128xf32, #tpu.memory_space<vmem>>, %arg4: memref<8x1xf32, #tpu.memory_space<vmem>>, %arg5: memref<2x8x128xf32, #tpu.memory_space<vmem>>) attributes {dimension_semantics = [#tpu.dimension_semantics<parallel>, #tpu.dimension_semantics<parallel>], iteration_bounds = array<i64: 1, 2>, scalar_prefetch = 0 : i64, scratch_operands = 0 : i64, tpu.core_type = #tpu.core_type<tc>, window_params = [{pipeline_mode = #tpu.pipeline_mode<synchronous>, transform_indices = @transform_0, window_bounds = array<i64: 8, 4>}, {transform_indices = @transform_1, window_bounds = array<i64: 2, 4, 128>}, {pipeline_mode = #tpu.pipeline_mode<synchronous>, transform_indices = @transform_2, window_bounds = array<i64: 8, 1>}, {transform_indices = @transform_3, window_bounds = array<i64: 2, 8, 128>}]} {
    %c0 = arith.constant 0 : index
    %c0_0 = arith.constant 0 : index
    %0 = vector.load %arg2[%c0, %c0_0] : memref<8x4xf32, #tpu.memory_space<vmem>>, vector<8x4xf32>
    %c0_1 = arith.constant 0 : index
    %c0_2 = arith.constant 0 : index
    %1 = vector.load %arg4[%c0_1, %c0_2] : memref<8x1xf32, #tpu.memory_space<vmem>>, vector<8x1xf32>
    %c0_3 = arith.constant 0 : index
    %c0_4 = arith.constant 0 : index
    %c0_5 = arith.constant 0 : index
    %2 = vector.load %arg3[%c0_3, %c0_4, %c0_5] : memref<2x4x128xf32, #tpu.memory_space<vmem>>, vector<1x4x128xf32>
    %3 = vector.shape_cast %2 : vector<1x4x128xf32> to vector<4x128xf32>
    %cst = arith.constant dense<0.000000e+00> : vector<8x128xf32>
    %4 = tpu.matmul %0, %3, %cst {dimension_numbers = #tpu.dot_dimension_numbers<[1], [0], [0], [1], [0, 0, 1, 1], [], []>} : vector<8x4xf32>, vector<4x128xf32>, vector<8x128xf32> -> vector<8x128xf32>
    %5 = vector.broadcast %1 : vector<8x1xf32> to vector<8x128xf32>
    %6 = arith.addf %4, %5 : vector<8x128xf32>
    %c0_6 = arith.constant 0 : index
    %c0_7 = arith.constant 0 : index
    %c0_8 = arith.constant 0 : index
    %7 = vector.load %arg5[%c0_6, %c0_7, %c0_8] : memref<2x8x128xf32, #tpu.memory_space<vmem>>, vector<1x8x128xf32>
    %8 = vector.shape_cast %7 : vector<1x8x128xf32> to vector<8x128xf32>
    %9 = vector.shape_cast %6 : vector<8x128xf32> to vector<1x8x128xf32>
    tpu.vector_store %arg5[%c0_6, %c0_7, %c0_8], %9 {strides = array<i32>} : memref<2x8x128xf32, #tpu.memory_space<vmem>>, vector<1x8x128xf32>,
    %c1 = arith.constant 1 : index
    %c0_9 = arith.constant 0 : index
    %c0_10 = arith.constant 0 : index
    %10 = vector.load %arg3[%c1, %c0_9, %c0_10] : memref<2x4x128xf32, #tpu.memory_space<vmem>>, vector<1x4x128xf32>
    %11 = vector.shape_cast %10 : vector<1x4x128xf32> to vector<4x128xf32>
    %cst_11 = arith.constant dense<0.000000e+00> : vector<8x128xf32>
    %12 = tpu.matmul %0, %11, %cst_11 {dimension_numbers = #tpu.dot_dimension_numbers<[1], [0], [0], [1], [0, 0, 1, 1], [], []>} : vector<8x4xf32>, vector<4x128xf32>, vector<8x128xf32> -> vector<8x128xf32>
    %13 = vector.broadcast %1 : vector<8x1xf32> to vector<8x128xf32>
    %14 = arith.addf %12, %13 : vector<8x128xf32>
    %c1_12 = arith.constant 1 : index
    %c0_13 = arith.constant 0 : index
    %c0_14 = arith.constant 0 : index
    %15 = vector.load %arg5[%c1_12, %c0_13, %c0_14] : memref<2x8x128xf32, #tpu.memory_space<vmem>>, vector<1x8x128xf32>
    %16 = vector.shape_cast %15 : vector<1x8x128xf32> to vector<8x128xf32>
    %17 = vector.shape_cast %14 : vector<8x128xf32> to vector<1x8x128xf32>
    tpu.vector_store %arg5[%c1_12, %c0_13, %c0_14], %17 {strides = array<i32>} : memref<2x8x128xf32, #tpu.memory_space<vmem>>, vector<1x8x128xf32>,
    return
  }
  func.func @transform_0(%arg0: i32, %arg1: i32) -> (i32, i32) {
    %c0_i32 = arith.constant 0 : i32
    %c0_i32_0 = arith.constant 0 : i32
    %c0_i32_1 = arith.constant 0 : i32
    return %c0_i32, %c0_i32_0 : i32, i32
  }
  func.func @transform_1(%arg0: i32, %arg1: i32) -> (i32, i32, i32) {
    %c0_i32 = arith.constant 0 : i32
    %c0_i32_0 = arith.constant 0 : i32
    return %arg0, %c0_i32, %arg1 : i32, i32, i32
  }
  func.func @transform_2(%arg0: i32, %arg1: i32) -> (i32, i32) {
    %c0_i32 = arith.constant 0 : i32
    %c0_i32_0 = arith.constant 0 : i32
    %c0_i32_1 = arith.constant 0 : i32
    return %c0_i32, %c0_i32_0 : i32, i32
  }
  func.func @transform_3(%arg0: i32, %arg1: i32) -> (i32, i32, i32) {
    %c0_i32 = arith.constant 0 : i32
    %c0_i32_0 = arith.constant 0 : i32
    return %arg0, %c0_i32, %arg1 : i32, i32, i32
  }
}

</mosaic_0001>

<bundles_post_ra>
// kernel: tpu_custom_call.1
= control target key start
LH: loop header
LB: loop body
LE: loop exit
PB: predicated region body
PF: predicated region fallthrough
CT: control target
= control target key end

     0   :  { %8 = vsyncpa [#allocation4], 0  ;;  %s827_s0 = inlined_call_operand.vmem [shape: f32[8,4], index: 0, kind: input, shape index: {}]   ;;  %s828_s1 = inlined_call_operand.vmem [shape: f32[2,4,256], index: 1, kind: input, shape index: {}]   ;;  %s829_s2 = inlined_call_operand.vmem [shape: f32[8,1], index: 2, kind: input, shape index: {}]   ;;  %s830_s3 = inlined_call_operand.hbm [shape: f32[2,8,256], index: 3, kind: output, shape index: {}]  }
   0x1   :  { %10 = vsyncpa [#allocation4 + $0x1], 0  ;;  %s697_s12 = smov 0   ;;  %s699_s13 = smov 0  }
   0x2   :  { %s701_s14 = smov 0   ;;  %s703_s15 = smov 0  }
   0x3   :  { %s705_s16 = smov 0   ;;  %s707_s17 = smov 0  }
   0x4 LB: > { %s495_s18 = sadd.s32 4294967295, %s668_s17   ;;  %s496_s19 = sadd.s32 4294967294, %s668_s17   ;;  %s668_s17 = sphi %s707_s17, %s16_s17   ;;  %s664_s16 = sphi %s705_s16, %s837_s16   ;;  %s660_s15 = sphi %s703_s15, %s836_s15   ;;  %s656_s14 = sphi %s701_s14, %s835_s14   ;;  %s652_s13 = sphi %s699_s13, %s834_s13   ;;  %s648_s12 = sphi %s697_s12, %s833_s12  }
   0x5   : > { %s25_s20 = sadd.s32 1, %s664_s16  ;;  %s58_s21 = sadd.s32 1, %s656_s14 }
   0x6   : > { %p26_p0 = scmp.ge.s32.totalorder %s25_s20, 2  ;;  %p65_p1 = scmp.ne.s32.totalorder %s656_s14, %s652_s13 }
   0x7   : > { %p66_p2 = scmp.eq.s32.totalorder %s668_s17, 0  ;;  %p118_p3 = scmp.eq.s32.totalorder %s495_s18, 1 }
   0x8   : > { %s839_s20 = smov (%p26_p0, %s25_s20), 0  ;;  %p123_p6 = scmp.ne.s32.totalorder %s652_s13, %s648_s12 }
   0x9   : > { %p67_p4 = por %p66_p2, %p65_p1  ;;  %p736_p5 = por %p118_p3, %p65_p1 }
   0xa   : > { %s54_s23 = ssub.s32 %s664_s16, %s839_s20  ;;  %p124_p8 = scmp.eq.s32.totalorder %s496_s19, 1 }
   0xb   : > { %p56_p7 = scmp.eq.s32.totalorder %s54_s23, 0  ;;  %p498_p10 = scmp.ge.s32.totalorder %s668_s17, 2 }
   0xc   : > { %p747_p9 = por %p124_p8, %p123_p6 }
   0xd   : > { %s745_s24 = scalar_select %p56_p7, %s656_s14, %s58_s21  }
   0xe   : > { %146 = sbr.rel (%p498_p10) target bundleno = 28 (0x1c), region = 24 }
  0x15   : > { %149 = sbr.rel (!%p67_p4) target bundleno = 28 (0x1c), region = 28  ;;  %s151_s26 = sand.u32 (%p67_p4), 1, %s656_s14  }
  0x16   : > { %s500_s27 = sshll.u32 (%p67_p4), %s664_s16, 2  ;;  %s499_s28 = sshll.u32 (%p67_p4), %s151_s26, 3 }
  0x17   : > { %s158_s4 = scalar_lea.vmem (%p67_p4), %s828_s1, %s500_s27  ;;  %s153_s5 = scalar_lea.vmem (%p67_p4), [#allocation2], %s499_s28 }
  0x18   : > { %v174_v0 = vld [vmem:[%s158_s4] sm:$0xf] (%p67_p4)  ;;  %v176_v1 = vld [vmem:[%s158_s4 + $0x8] sm:$0xf] (%p67_p4) }
  0x19   : > { %175 = vst [vmem:[%s153_s5] sm:$0xf] (%p67_p4), %v174_v0  ;;  %177 = vst [vmem:[%s153_s5 + $0x4] sm:$0xf] (%p67_p4), %v176_v1 }
  0x1c PF: > { %p501_p11 = scmp.ge.s32.totalorder %s668_s17, 1  ;;  %p203_p12 = scmp.lt.s32.totalorder %s668_s17, 3 }
  0x1e   : > { %p204_p13 = pnand %p501_p11, %p203_p12 }
  0x1f   : > { %s762_s6 = sand.u32 (!%p204_p13), 1, %s652_s13   ;;  %v670_v2 = vmov (!%p204_p13), 0.0   ;;  %vm247_vm0 = vcmask (!%p204_p13), 1043456   ;;  %vm671_vm1 = vmmov (!%p204_p13), 0   ;;  %v235_v3 = vld [vmem:[%s827_s0] sm:$0xff] (!%p204_p13)  ;;  %vm243_vm2 = vcmask (!%p204_p13), 31744  }
  0x20   : > { %207 = sbr.rel (%p204_p13) target bundleno = 266 (0x10a), region = 69  ;;  %518 = vmatprep.subr.mxu0 (!%p204_p13), %v670_v2  ;;  %523 = vmatprep.subr.mxu1 (!%p204_p13), %v670_v2  ;;  %s502_s7 = sshll.u32 (!%p204_p13), %s762_s6, 3  ;;  %v672_v6 = vmov (!%p204_p13), 0   ;;  %v236_v7 = vld [vmem:[%s829_s2] sm:$0xff] (!%p204_p13) }
  0x21   : > { %520 = vmatprep.mubr.msk.f32.mxu0 (!%p204_p13), %vm671_vm1, %v670_v2  ;;  %525 = vmatprep.mubr.msk.f32.mxu1 (!%p204_p13), %vm671_vm1, %v670_v2  ;;  %s212_s10 = scalar_lea.vmem (!%p204_p13), [#allocation2], %s502_s7  ;;  %s503_s19 = sshll.u32 (!%p204_p13), %s762_s6, 4 }
  0x22   : > { %v237_v4 = vld [vmem:[%s212_s10] sm:$0xf] (!%p204_p13)  ;;  %v506_v5 = vld [vmem:[%s212_s10 + $0x4] sm:$0xf] (!%p204_p13)  ;;  %589 = vset.pattern.permute.xlu0 (!%p204_p13), %v672_v6  ;;  %s232_s21 = scalar_lea.vmem (!%p204_p13), [#allocation3], %s503_s19  ;;  %s511_s26 = sshll.u32 (!%p204_p13), %s660_s15, 7 }
  0x23   : > { %519 = vmatpush3.msk.msra.mxu0 (!%p204_p13), %vm247_vm0, %v237_v4  ;;  %524 = vmatpush3.msk.msra.mxu1 (!%p204_p13), %vm247_vm0, %v506_v5  ;;  %s415_s23 = sshll.u32 (!%p204_p13), %s232_s21, 4  ;;  %s778_s29 = scalar_lea.hbm (!%p204_p13), %s830_s3, %s511_s26  ;;  %s773_s23 = int_to_ptr.vmem [resolvable:$true] %s415_s23 }
  0x24   : > { %521 = vmatmul.mubr.msk.f32.vlgmr.msra.gmra.mrb[0].mxu0 (!%p204_p13), %vm243_vm2, %v235_v3  ;;  %526 = vmatmul.mubr.msk.f32.vlgmr.msra.gmra.mrb[0].mxu1 (!%p204_p13), %vm243_vm2, %v235_v3  ;;  %s400_s15 = scalar_lea.sflag (!%p204_p13), [#allocation4], %s762_s6  ;;  %s590_s30 = scalar_lea.vmem (!%p204_p13), %s773_s23, 256 }
  0x25   : > { %240 = vperm.xlu0 (!%p204_p13), %589, %v236_v7   ;;  %p591_p0 = scmp.ne.s32.totalorder (!%p204_p13), %s773_s23, %s590_s30  ;;  %s673_s4 = smov (!%p204_p13), [#allocation3]  }
  0x26   : > { %s594_s5 = sshll.u32 (!%p204_p13), %s673_s4, 4  ;;  %s595_s5 = int_to_ptr.vmem [resolvable:$false] %s594_s5 }
  0x27   : > { %p592_p1 = pnand %p591_p0, %p736_p5  ;;  %s596_s7 = scalar_lea.vmem %s595_s5, 512 }
  0x28   : > { %p597_p3 = scmp.lt.s32.totalorder %s773_s23, %s595_s5  ;;  %p598_p4 = scmp.lt.s32.totalorder %s596_s7, %s590_s30 }
  0x29   : > { %p593_p2 = pneg %p592_p1 }
  0x2a   : > { %p599_p6 = por %p598_p4, %p597_p3 }
  0x2c   : > { %p600_p7 = pnand %p599_p6, %p593_p2 }
  0xa4   : > { %v241_v8 = vpop.permute.xlu0 %240 }
  0xf7   : > { %v317_v9 = vpop.f32.mrb[0].mxu0  ;;  %v393_v10 = vpop.f32.mrb[0].mxu1 }
  0xf8   : > { %v318_v11 = vadd.f32 %v317_v9, %v241_v8  ;;  %v394_v12 = vadd.f32 %v393_v10, %v241_v8  ;;  %v522_v13 = vpop.f32.mrb[1].mxu0  ;;  %v527_v14 = vpop.f32.mrb[1].mxu1 }
  0xfa   : > { %321 = vst [vmem:[%s232_s21] sm:$0xff] %v318_v11  ;;  %509 = vst [vmem:[%s232_s21 + $0x8] sm:$0xff] %v394_v12 }
  0xfb   : > { %603 = shalt.err (!%p600_p7)
}
  0xfc   : > { %s604_s8 = scalar_lea.hbm %s778_s29, 256  ;;  %s608_s11 = scalar_lea.hbm %s830_s3, 512 }
  0xfd   : > { %p605_p8 = scmp.ne.s32.totalorder %s778_s29, %s604_s8  ;;  %p609_p13 = scmp.lt.u32.totalorder %s778_s29, %s830_s3 }
  0xfe   : > { %p610_p0 = scmp.lt.u32.totalorder %s608_s11, %s604_s8  ;;  %p612_p2 = scmp.lt.u32.totalorder %s604_s8, %s778_s29 }
  0xff   : > { %p606_p11 = pnand %p605_p8, %p736_p5 }
 0x100   : > { %p611_p1 = por %p610_p0, %p609_p13 }
 0x101   : > { %p607_p12 = pneg %p606_p11 }
 0x102   : > { %p613_p3 = por %p612_p2, %p611_p1 }
 0x104   : > { %p614_p4 = pnand %p613_p3, %p607_p12 }
 0x106   : > { %617 = shalt.err (!%p614_p4)
}
 0x107   : > { %s674_s21 = smov 128   ;;  %s675_s26 = smov 256  }
 0x108   : > { %s676_s27 = smov 8  }
 0x109   : > { %528 = dma.vmem_to_hbm [thread:$0]  (%p736_p5), %s773_s23, 256, %s778_s29, %s400_s15, %s674_s21, %s675_s26, %s676_s27  }
 0x10a PF: > { %s430_s28 = sand.u32 1, %s648_s12   ;;  %p531_p6 = pnand %p498_p10, %p747_p9 }
 0x10b   : > { %s431_s30 = scalar_lea.sflag [#allocation4], %s430_s28 }
 0x10c   : > { %643 = dma.done.wait (!%p531_p6), %s431_s30, 256  }
 0x10d   : > { %645 = vsyncadd (!%p531_p6), %s431_s30, 4294967040  ;;  %s16_s17 = sadd.s32 1, %s668_s17   ;;  %s833_s12 = smov %s652_s13 }
 0x10e   : > { %p13_p7 = scmp.ge.s32.totalorder %s16_s17, 4   ;;  %s834_s13 = smov %s656_s14 }
 0x10f   : > { %s835_s14 = smov %s745_s24  ;;  %s836_s15 = smov %s664_s16 }
 0x110   : > { %s837_s16 = smov %s839_s20  ;;  %15 = sbr.rel (!%p13_p7) target bundleno = 4 (0x4), region = 115 }
 0x117   :  { %436 = vsyncpa [#allocation4], 1 }
 0x118   :  { %438 = vsyncpa [#allocation4 + $0x1], 1 }

// kernel: tpu_custom_call.1
= control target key start
LH: loop header
LB: loop body
LE: loop exit
PB: predicated region body
PF: predicated region fallthrough
CT: control target
= control target key end

     0   :  { %8 = vsyncpa [#allocation4], 0  ;;  %s827_s0 = inlined_call_operand.vmem [shape: f32[8,4], index: 0, kind: input, shape index: {}]   ;;  %s828_s1 = inlined_call_operand.vmem [shape: f32[2,4,256], index: 1, kind: input, shape index: {}]   ;;  %s829_s2 = inlined_call_operand.vmem [shape: f32[8,1], index: 2, kind: input, shape index: {}]   ;;  %s830_s3 = inlined_call_operand.hbm [shape: f32[2,8,256], index: 3, kind: output, shape index: {}]  }
   0x1   :  { %10 = vsyncpa [#allocation4 + $0x1], 0  ;;  %s697_s12 = smov 0   ;;  %s699_s13 = smov 0  }
   0x2   :  { %s701_s14 = smov 0   ;;  %s703_s15 = smov 0  }
   0x3   :  { %s705_s16 = smov 0   ;;  %s707_s17 = smov 0  }
   0x4 LB: > { %s495_s18 = sadd.s32 4294967295, %s668_s17   ;;  %s496_s19 = sadd.s32 4294967294, %s668_s17   ;;  %s668_s17 = sphi %s707_s17, %s16_s17   ;;  %s664_s16 = sphi %s705_s16, %s837_s16   ;;  %s660_s15 = sphi %s703_s15, %s836_s15   ;;  %s656_s14 = sphi %s701_s14, %s835_s14   ;;  %s652_s13 = sphi %s699_s13, %s834_s13   ;;  %s648_s12 = sphi %s697_s12, %s833_s12  }
   0x5   : > { %s25_s20 = sadd.s32 1, %s664_s16  ;;  %s58_s21 = sadd.s32 1, %s656_s14 }
   0x6   : > { %p26_p0 = scmp.ge.s32.totalorder %s25_s20, 2  ;;  %p65_p1 = scmp.ne.s32.totalorder %s656_s14, %s652_s13 }
   0x7   : > { %p66_p2 = scmp.eq.s32.totalorder %s668_s17, 0  ;;  %p118_p3 = scmp.eq.s32.totalorder %s495_s18, 1 }
   0x8   : > { %s839_s20 = smov (%p26_p0, %s25_s20), 0  ;;  %p123_p6 = scmp.ne.s32.totalorder %s652_s13, %s648_s12 }
   0x9   : > { %p67_p4 = por %p66_p2, %p65_p1  ;;  %p736_p5 = por %p118_p3, %p65_p1 }
   0xa   : > { %s54_s23 = ssub.s32 %s664_s16, %s839_s20  ;;  %p124_p8 = scmp.eq.s32.totalorder %s496_s19, 1 }
   0xb   : > { %p56_p7 = scmp.eq.s32.totalorder %s54_s23, 0  ;;  %p498_p10 = scmp.ge.s32.totalorder %s668_s17, 2 }
   0xc   : > { %p747_p9 = por %p124_p8, %p123_p6 }
   0xd   : > { %s745_s24 = scalar_select %p56_p7, %s656_s14, %s58_s21  }
   0xe   : > { %146 = sbr.rel (%p498_p10) target bundleno = 28 (0x1c), region = 24 }
  0x15   : > { %149 = sbr.rel (!%p67_p4) target bundleno = 28 (0x1c), region = 28  ;;  %s151_s26 = sand.u32 (%p67_p4), 1, %s656_s14  }
  0x16   : > { %s500_s27 = sshll.u32 (%p67_p4), %s664_s16, 2  ;;  %s499_s28 = sshll.u32 (%p67_p4), %s151_s26, 3 }
  0x17   : > { %s158_s4 = scalar_lea.vmem (%p67_p4), %s828_s1, %s500_s27  ;;  %s153_s5 = scalar_lea.vmem (%p67_p4), [#allocation2], %s499_s28 }
  0x18   : > { %v174_v0 = vld [vmem:[%s158_s4] sm:$0xf] (%p67_p4)  ;;  %v176_v1 = vld [vmem:[%s158_s4 + $0x8] sm:$0xf] (%p67_p4) }
  0x19   : > { %175 = vst [vmem:[%s153_s5] sm:$0xf] (%p67_p4), %v174_v0  ;;  %177 = vst [vmem:[%s153_s5 + $0x4] sm:$0xf] (%p67_p4), %v176_v1 }
  0x1c PF: > { %p501_p11 = scmp.ge.s32.totalorder %s668_s17, 1  ;;  %p203_p12 = scmp.lt.s32.totalorder %s668_s17, 3 }
  0x1e   : > { %p204_p13 = pnand %p501_p11, %p203_p12 }
  0x1f   : > { %s762_s6 = sand.u32 (!%p204_p13), 1, %s652_s13   ;;  %v670_v2 = vmov (!%p204_p13), 0.0   ;;  %vm247_vm0 = vcmask (!%p204_p13), 1043456   ;;  %vm671_vm1 = vmmov (!%p204_p13), 0   ;;  %v235_v3 = vld [vmem:[%s827_s0] sm:$0xff] (!%p204_p13)  ;;  %vm243_vm2 = vcmask (!%p204_p13), 31744  }
  0x20   : > { %207 = sbr.rel (%p204_p13) target bundleno = 266 (0x10a), region = 69  ;;  %518 = vmatprep.subr.mxu0 (!%p204_p13), %v670_v2  ;;  %523 = vmatprep.subr.mxu1 (!%p204_p13), %v670_v2  ;;  %s502_s7 = sshll.u32 (!%p204_p13), %s762_s6, 3  ;;  %v672_v6 = vmov (!%p204_p13), 0   ;;  %v236_v7 = vld [vmem:[%s829_s2] sm:$0xff] (!%p204_p13) }
  0x21   : > { %520 = vmatprep.mubr.msk.f32.mxu0 (!%p204_p13), %vm671_vm1, %v670_v2  ;;  %525 = vmatprep.mubr.msk.f32.mxu1 (!%p204_p13), %vm671_vm1, %v670_v2  ;;  %s212_s10 = scalar_lea.vmem (!%p204_p13), [#allocation2], %s502_s7  ;;  %s503_s19 = sshll.u32 (!%p204_p13), %s762_s6, 4 }
  0x22   : > { %v237_v4 = vld [vmem:[%s212_s10] sm:$0xf] (!%p204_p13)  ;;  %v506_v5 = vld [vmem:[%s212_s10 + $0x4] sm:$0xf] (!%p204_p13)  ;;  %589 = vset.pattern.permute.xlu0 (!%p204_p13), %v672_v6  ;;  %s232_s21 = scalar_lea.vmem (!%p204_p13), [#allocation3], %s503_s19  ;;  %s511_s26 = sshll.u32 (!%p204_p13), %s660_s15, 7 }
  0x23   : > { %519 = vmatpush3.msk.msra.mxu0 (!%p204_p13), %vm247_vm0, %v237_v4  ;;  %524 = vmatpush3.msk.msra.mxu1 (!%p204_p13), %vm247_vm0, %v506_v5  ;;  %s415_s23 = sshll.u32 (!%p204_p13), %s232_s21, 4  ;;  %s778_s29 = scalar_lea.hbm (!%p204_p13), %s830_s3, %s511_s26  ;;  %s773_s23 = int_to_ptr.vmem [resolvable:$true] %s415_s23 }
  0x24   : > { %521 = vmatmul.mubr.msk.f32.vlgmr.msra.gmra.mrb[0].mxu0 (!%p204_p13), %vm243_vm2, %v235_v3  ;;  %526 = vmatmul.mubr.msk.f32.vlgmr.msra.gmra.mrb[0].mxu1 (!%p204_p13), %vm243_vm2, %v235_v3  ;;  %s400_s15 = scalar_lea.sflag (!%p204_p13), [#allocation4], %s762_s6  ;;  %s590_s30 = scalar_lea.vmem (!%p204_p13), %s773_s23, 256 }
  0x25   : > { %240 = vperm.xlu0 (!%p204_p13), %589, %v236_v7   ;;  %p591_p0 = scmp.ne.s32.totalorder (!%p204_p13), %s773_s23, %s590_s30  ;;  %s673_s4 = smov (!%p204_p13), [#allocation3]  }
  0x26   : > { %s594_s5 = sshll.u32 (!%p204_p13), %s673_s4, 4  ;;  %s595_s5 = int_to_ptr.vmem [resolvable:$false] %s594_s5 }
  0x27   : > { %p592_p1 = pnand %p591_p0, %p736_p5  ;;  %s596_s7 = scalar_lea.vmem %s595_s5, 512 }
  0x28   : > { %p597_p3 = scmp.lt.s32.totalorder %s773_s23, %s595_s5  ;;  %p598_p4 = scmp.lt.s32.totalorder %s596_s7, %s590_s30 }
  0x29   : > { %p593_p2 = pneg %p592_p1 }
  0x2a   : > { %p599_p6 = por %p598_p4, %p597_p3 }
  0x2c   : > { %p600_p7 = pnand %p599_p6, %p593_p2 }
  0xa4   : > { %v241_v8 = vpop.permute.xlu0 %240 }
  0xf7   : > { %v317_v9 = vpop.f32.mrb[0].mxu0  ;;  %v393_v10 = vpop.f32.mrb[0].mxu1 }
  0xf8   : > { %v318_v11 = vadd.f32 %v317_v9, %v241_v8  ;;  %v394_v12 = vadd.f32 %v393_v10, %v241_v8  ;;  %v522_v13 = vpop.f32.mrb[1].mxu0  ;;  %v527_v14 = vpop.f32.mrb[1].mxu1 }
  0xfa   : > { %321 = vst [vmem:[%s232_s21] sm:$0xff] %v318_v11  ;;  %509 = vst [vmem:[%s232_s21 + $0x8] sm:$0xff] %v394_v12 }
  0xfb   : > { %603 = shalt.err (!%p600_p7)
}
  0xfc   : > { %s604_s8 = scalar_lea.hbm %s778_s29, 256  ;;  %s608_s11 = scalar_lea.hbm %s830_s3, 512 }
  0xfd   : > { %p605_p8 = scmp.ne.s32.totalorder %s778_s29, %s604_s8  ;;  %p609_p13 = scmp.lt.u32.totalorder %s778_s29, %s830_s3 }
  0xfe   : > { %p610_p0 = scmp.lt.u32.totalorder %s608_s11, %s604_s8  ;;  %p612_p2 = scmp.lt.u32.totalorder %s604_s8, %s778_s29 }
  0xff   : > { %p606_p11 = pnand %p605_p8, %p736_p5 }
 0x100   : > { %p611_p1 = por %p610_p0, %p609_p13 }
 0x101   : > { %p607_p12 = pneg %p606_p11 }
 0x102   : > { %p613_p3 = por %p612_p2, %p611_p1 }
 0x104   : > { %p614_p4 = pnand %p613_p3, %p607_p12 }
 0x106   : > { %617 = shalt.err (!%p614_p4)
}
 0x107   : > { %s674_s21 = smov 128   ;;  %s675_s26 = smov 256  }
 0x108   : > { %s676_s27 = smov 8  }
 0x109   : > { %528 = dma.vmem_to_hbm [thread:$0]  (%p736_p5), %s773_s23, 256, %s778_s29, %s400_s15, %s674_s21, %s675_s26, %s676_s27  }
 0x10a PF: > { %s430_s28 = sand.u32 1, %s648_s12   ;;  %p531_p6 = pnand %p498_p10, %p747_p9 }
 0x10b   : > { %s431_s30 = scalar_lea.sflag [#allocation4], %s430_s28 }
 0x10c   : > { %643 = dma.done.wait (!%p531_p6), %s431_s30, 256  }
 0x10d   : > { %645 = vsyncadd (!%p531_p6), %s431_s30, 4294967040  ;;  %s16_s17 = sadd.s32 1, %s668_s17   ;;  %s833_s12 = smov %s652_s13 }
 0x10e   : > { %p13_p7 = scmp.ge.s32.totalorder %s16_s17, 4   ;;  %s834_s13 = smov %s656_s14 }
 0x10f   : > { %s835_s14 = smov %s745_s24  ;;  %s836_s15 = smov %s664_s16 }
 0x110   : > { %s837_s16 = smov %s839_s20  ;;  %15 = sbr.rel (!%p13_p7) target bundleno = 4 (0x4), region = 115 }
 0x117   :  { %436 = vsyncpa [#allocation4], 1 }
 0x118   :  { %438 = vsyncpa [#allocation4 + $0x1], 1 }

</bundles_post_ra>
